<compile_context>
chip_gen: v7x
topology: tpu7x:2x2x1
jax: 0.10.0
libtpu: 0.0.40
codegen_flags: <defaults>
</compile_context>

<pallas_src>
import jax
import jax.numpy as jnp
from jax.experimental import pallas as pl
from jax.experimental.pallas import tpu as pltpu


# ----------------------------------------------------------------------------
# Pallas kernel: 2-layer RNN recurrence (fused ih/hh matmuls, register-carried
# hidden state, fully unrolled time loop) + post-loop batched FC + tanh.
# Everything fits in VMEM at these sizes, so no grid is used.
# ----------------------------------------------------------------------------
def rnn_fc_kernel(x_ref,        # (T, B, D)        time-major input
                  w0_ref,       # (D+H, H)         [W_ih0^T ; W_hh0^T]
                  b0_ref,       # (1, H)           b_ih0 + b_hh0
                  w1_ref,       # (2H, H)          [W_ih1^T ; W_hh1^T]
                  b1_ref,       # (1, H)           b_ih1 + b_hh1
                  wfc_ref,      # (H, O)           W_fc^T
                  bfc_ref,      # (1, O)
                  out_ref,      # (T*B, O)         fc(tanh-activated) output
                  hid_ref):     # (2, B, H)        final hidden state per layer
    T, B, _ = x_ref.shape
    H = hid_ref.shape[2]

    # Hoist all loads out of the time loop; pre-broadcast biases once.
    x = x_ref[...]                                   # (T, B, D), single load
    w0 = w0_ref[...]                                 # (D+H, H)
    w1 = w1_ref[...]                                 # (2H, H)
    b0 = jnp.broadcast_to(b0_ref[...], (B, H))
    b1 = jnp.broadcast_to(b1_ref[...], (B, H))

    h0 = jnp.zeros((B, H), jnp.float32)              # init_hidden() -> zeros
    h1 = jnp.zeros((B, H), jnp.float32)

    h1_steps = []
    for t in range(T):                               # static unroll (T small)
        x_t = x[t]                                   # (B, D)
        # layer 0: tanh([x_t | h0_prev] @ [[W_ih0^T];[W_hh0^T]] + b0)
        h0 = jnp.tanh(
            jnp.dot(jnp.concatenate([x_t, h0], axis=-1), w0,
                    preferred_element_type=jnp.float32) + b0)
        # layer 1: tanh([h0 | h1_prev] @ [[W_ih1^T];[W_hh1^T]] + b1)
        h1 = jnp.tanh(
            jnp.dot(jnp.concatenate([h0, h1], axis=-1), w1,
                    preferred_element_type=jnp.float32) + b1)
        h1_steps.append(h1)

    # Batched FC + output activation, hoisted off the serial chain.
    # Rows ordered t-major then b == PyTorch out.contiguous().view(-1, H)
    # for batch_first=False.
    rnn_out = jnp.concatenate(h1_steps, axis=0)      # (T*B, H)
    out_ref[...] = jnp.tanh(
        jnp.dot(rnn_out, wfc_ref[...], preferred_element_type=jnp.float32)
        + bfc_ref[...])

    hid_ref[0] = h0
    hid_ref[1] = h1


# ----------------------------------------------------------------------------
# Wrapper: weight fusion (done once, outside the kernel) + pallas_call.
# ----------------------------------------------------------------------------
def rnn_forward(states, params):
    """states: (T, B, state_dim) float32 (batch_first=False, like the module).

    Returns (out (T*B, O), hidden (n_layers=2, B, H))."""
    T, B, D = states.shape
    H = params["w_hh0"].shape[0]
    O = params["w_fc"].shape[0]

    # Fused per-layer weights so the kernel does one matmul per layer per step.
    w0 = jnp.concatenate([params["w_ih0"].T, params["w_hh0"].T], axis=0)  # (D+H, H)
    w1 = jnp.concatenate([params["w_ih1"].T, params["w_hh1"].T], axis=0)  # (2H, H)
    b0 = (params["b_ih0"] + params["b_hh0"]).reshape(1, H)
    b1 = (params["b_ih1"] + params["b_hh1"]).reshape(1, H)
    wfc = params["w_fc"].T                                                # (H, O)
    bfc = params["b_fc"].reshape(1, O)

    vmem = pl.BlockSpec(memory_space=pltpu.MemorySpace.VMEM)

    flops = 2 * T * B * ((D + H) * H + 2 * H * H) + 2 * T * B * H * O
    transcendentals = 2 * T * B * H + T * B * O
    bytes_accessed = 4 * (T * B * D + (D + H) * H + 2 * H * H + 2 * H
                          + H * O + O + T * B * O + 2 * B * H)

    out, hidden = pl.pallas_call(
        rnn_fc_kernel,
        out_shape=(
            jax.ShapeDtypeStruct((T * B, O), jnp.float32),
            jax.ShapeDtypeStruct((2, B, H), jnp.float32),
        ),
        in_specs=[vmem] * 7,
        out_specs=(vmem, vmem),
        cost_estimate=pl.CostEstimate(
            flops=flops,
            transcendentals=transcendentals,
            bytes_accessed=bytes_accessed,
        ),
    )(states, w0, b0, w1, b1, wfc, bfc)

    return out, hidden


# ----------------------------------------------------------------------------
# Pure-JAX reference (for correctness check)
# ----------------------------------------------------------------------------
def reference_forward(states, params):
    T, B, _ = states.shape
    H = params["w_hh0"].shape[0]
    h0 = jnp.zeros((B, H), jnp.float32)
    h1 = jnp.zeros((B, H), jnp.float32)
    outs = []
    for t in range(T):
        x_t = states[t]
        h0 = jnp.tanh(x_t @ params["w_ih0"].T + params["b_ih0"]
                      + h0 @ params["w_hh0"].T + params["b_hh0"])
        h1 = jnp.tanh(h0 @ params["w_ih1"].T + params["b_ih1"]
                      + h1 @ params["w_hh1"].T + params["b_hh1"])
        outs.append(h1)
    rnn_out = jnp.stack(outs, axis=0).reshape(T * B, H)
    out = jnp.tanh(rnn_out @ params["w_fc"].T + params["b_fc"])
    hidden = jnp.stack([h0, h1], axis=0)
    return out, hidden


def init_params(key, state_dim, hidden_size, output_size):
    """Deterministic PyTorch-style uniform(-1/sqrt(H), 1/sqrt(H)) init."""
    ks = jax.random.split(key, 10)
    s = 1.0 / jnp.sqrt(hidden_size)

    def u(k, shape):
        return jax.random.uniform(k, shape, jnp.float32, -s, s)

    return {
        "w_ih0": u(ks[0], (hidden_size, state_dim)),
        "w_hh0": u(ks[1], (hidden_size, hidden_size)),
        "b_ih0": u(ks[2], (hidden_size,)),
        "b_hh0": u(ks[3], (hidden_size,)),
        "w_ih1": u(ks[4], (hidden_size, hidden_size)),
        "w_hh1": u(ks[5], (hidden_size, hidden_size)),
        "b_ih1": u(ks[6], (hidden_size,)),
        "b_hh1": u(ks[7], (hidden_size,)),
        "w_fc": u(ks[8], (output_size, hidden_size)),
        "b_fc": u(ks[9], (output_size,)),
    }


if __name__ == "__main__":
    # Shapes consistent with the module (batch_first=False):
    # states: (seq, batch, state_dim); hidden_size=32, n_layers=2, output_size=4
    T, B = 8, 2
    STATE_DIM, HIDDEN, OUTPUT = 4, 32, 4

    key = jax.random.PRNGKey(0)
    pkey, xkey = jax.random.split(key)
    params = init_params(pkey, STATE_DIM, HIDDEN, OUTPUT)
    states = jax.random.normal(xkey, (T, B, STATE_DIM), jnp.float32)

    out, hidden = rnn_forward(states, params)
    jax.block_until_ready((out, hidden))

    out_ref, hidden_ref = reference_forward(states, params)
    assert out.shape == (T * B, OUTPUT)
    assert hidden.shape == (2, B, HIDDEN)
    assert jnp.allclose(out, out_ref, atol=1e-5, rtol=1e-5)
    assert jnp.allclose(hidden, hidden_ref, atol=1e-5, rtol=1e-5)

    print("KERNEL_OK")
</pallas_src>

<mosaic_0001>
module attributes {stable_mosaic.version = 11 : i64} {
  func.func @rnn_fc_kernel(%arg0: memref<8x2x4xf32, #tpu.memory_space<vmem>>, %arg1: memref<36x32xf32, #tpu.memory_space<vmem>>, %arg2: memref<1x32xf32, #tpu.memory_space<vmem>>, %arg3: memref<64x32xf32, #tpu.memory_space<vmem>>, %arg4: memref<1x32xf32, #tpu.memory_space<vmem>>, %arg5: memref<32x4xf32, #tpu.memory_space<vmem>>, %arg6: memref<1x4xf32, #tpu.memory_space<vmem>>, %arg7: memref<16x4xf32, #tpu.memory_space<vmem>>, %arg8: memref<2x2x32xf32, #tpu.memory_space<vmem>>) attributes {dimension_semantics = [], scalar_prefetch = 0 : i64, scratch_operands = 0 : i64, tpu.core_type = #tpu.core_type<tc>} {
    %c0 = arith.constant 0 : index
    %c0_0 = arith.constant 0 : index
    %c0_1 = arith.constant 0 : index
    %0 = vector.load %arg0[%c0, %c0_0, %c0_1] : memref<8x2x4xf32, #tpu.memory_space<vmem>>, vector<8x2x4xf32>
    %c0_2 = arith.constant 0 : index
    %c0_3 = arith.constant 0 : index
    %1 = vector.load %arg1[%c0_2, %c0_3] : memref<36x32xf32, #tpu.memory_space<vmem>>, vector<36x32xf32>
    %c0_4 = arith.constant 0 : index
    %c0_5 = arith.constant 0 : index
    %2 = vector.load %arg3[%c0_4, %c0_5] : memref<64x32xf32, #tpu.memory_space<vmem>>, vector<64x32xf32>
    %c0_6 = arith.constant 0 : index
    %c0_7 = arith.constant 0 : index
    %3 = vector.load %arg2[%c0_6, %c0_7] : memref<1x32xf32, #tpu.memory_space<vmem>>, vector<1x32xf32>
    %4 = vector.shape_cast %3 : vector<1x32xf32> to vector<1x32xf32>
    %5 = vector.broadcast %4 : vector<1x32xf32> to vector<2x32xf32>
    %c0_8 = arith.constant 0 : index
    %c0_9 = arith.constant 0 : index
    %6 = vector.load %arg4[%c0_8, %c0_9] : memref<1x32xf32, #tpu.memory_space<vmem>>, vector<1x32xf32>
    %7 = vector.shape_cast %6 : vector<1x32xf32> to vector<1x32xf32>
    %8 = vector.broadcast %7 : vector<1x32xf32> to vector<2x32xf32>
    %cst = arith.constant 0.000000e+00 : f32
    %9 = vector.broadcast %cst : f32 to vector<2x32xf32>
    %cst_10 = arith.constant 0.000000e+00 : f32
    %10 = vector.broadcast %cst_10 : f32 to vector<2x32xf32>
    %11 = vector.extract_strided_slice %0 {offsets = [0, 0, 0], sizes = [1, 2, 4], strides = [1, 1, 1]} : vector<8x2x4xf32> to vector<1x2x4xf32>
    %12 = vector.shape_cast %11 : vector<1x2x4xf32> to vector<2x4xf32>
    %13 = tpu.concatenate %12, %9 in 1 : vector<2x4xf32>, vector<2x32xf32> -> vector<2x36xf32>
    %cst_11 = arith.constant dense<0.000000e+00> : vector<2x32xf32>
    %14 = tpu.matmul %13, %1, %cst_11 {dimension_numbers = #tpu.dot_dimension_numbers<[1], [0], [0], [1], [0, 0, 1, 1], [], []>} : vector<2x36xf32>, vector<36x32xf32>, vector<2x32xf32> -> vector<2x32xf32>
    %15 = arith.addf %14, %5 : vector<2x32xf32>
    %16 = math.tanh %15 : vector<2x32xf32>
    %17 = tpu.concatenate %16, %10 in 1 : vector<2x32xf32>, vector<2x32xf32> -> vector<2x64xf32>
    %cst_12 = arith.constant dense<0.000000e+00> : vector<2x32xf32>
    %18 = tpu.matmul %17, %2, %cst_12 {dimension_numbers = #tpu.dot_dimension_numbers<[1], [0], [0], [1], [0, 0, 1, 1], [], []>} : vector<2x64xf32>, vector<64x32xf32>, vector<2x32xf32> -> vector<2x32xf32>
    %19 = arith.addf %18, %8 : vector<2x32xf32>
    %20 = math.tanh %19 : vector<2x32xf32>
    %21 = vector.extract_strided_slice %0 {offsets = [1, 0, 0], sizes = [1, 2, 4], strides = [1, 1, 1]} : vector<8x2x4xf32> to vector<1x2x4xf32>
    %22 = vector.shape_cast %21 : vector<1x2x4xf32> to vector<2x4xf32>
    %23 = tpu.concatenate %22, %16 in 1 : vector<2x4xf32>, vector<2x32xf32> -> vector<2x36xf32>
    %cst_13 = arith.constant dense<0.000000e+00> : vector<2x32xf32>
    %24 = tpu.matmul %23, %1, %cst_13 {dimension_numbers = #tpu.dot_dimension_numbers<[1], [0], [0], [1], [0, 0, 1, 1], [], []>} : vector<2x36xf32>, vector<36x32xf32>, vector<2x32xf32> -> vector<2x32xf32>
    %25 = arith.addf %24, %5 : vector<2x32xf32>
    %26 = math.tanh %25 : vector<2x32xf32>
    %27 = tpu.concatenate %26, %20 in 1 : vector<2x32xf32>, vector<2x32xf32> -> vector<2x64xf32>
    %cst_14 = arith.constant dense<0.000000e+00> : vector<2x32xf32>
    %28 = tpu.matmul %27, %2, %cst_14 {dimension_numbers = #tpu.dot_dimension_numbers<[1], [0], [0], [1], [0, 0, 1, 1], [], []>} : vector<2x64xf32>, vector<64x32xf32>, vector<2x32xf32> -> vector<2x32xf32>
    %29 = arith.addf %28, %8 : vector<2x32xf32>
    %30 = math.tanh %29 : vector<2x32xf32>
    %31 = vector.extract_strided_slice %0 {offsets = [2, 0, 0], sizes = [1, 2, 4], strides = [1, 1, 1]} : vector<8x2x4xf32> to vector<1x2x4xf32>
    %32 = vector.shape_cast %31 : vector<1x2x4xf32> to vector<2x4xf32>
    %33 = tpu.concatenate %32, %26 in 1 : vector<2x4xf32>, vector<2x32xf32> -> vector<2x36xf32>
    %cst_15 = arith.constant dense<0.000000e+00> : vector<2x32xf32>
    %34 = tpu.matmul %33, %1, %cst_15 {dimension_numbers = #tpu.dot_dimension_numbers<[1], [0], [0], [1], [0, 0, 1, 1], [], []>} : vector<2x36xf32>, vector<36x32xf32>, vector<2x32xf32> -> vector<2x32xf32>
    %35 = arith.addf %34, %5 : vector<2x32xf32>
    %36 = math.tanh %35 : vector<2x32xf32>
    %37 = tpu.concatenate %36, %30 in 1 : vector<2x32xf32>, vector<2x32xf32> -> vector<2x64xf32>
    %cst_16 = arith.constant dense<0.000000e+00> : vector<2x32xf32>
    %38 = tpu.matmul %37, %2, %cst_16 {dimension_numbers = #tpu.dot_dimension_numbers<[1], [0], [0], [1], [0, 0, 1, 1], [], []>} : vector<2x64xf32>, vector<64x32xf32>, vector<2x32xf32> -> vector<2x32xf32>
    %39 = arith.addf %38, %8 : vector<2x32xf32>
    %40 = math.tanh %39 : vector<2x32xf32>
    %41 = vector.extract_strided_slice %0 {offsets = [3, 0, 0], sizes = [1, 2, 4], strides = [1, 1, 1]} : vector<8x2x4xf32> to vector<1x2x4xf32>
    %42 = vector.shape_cast %41 : vector<1x2x4xf32> to vector<2x4xf32>
    %43 = tpu.concatenate %42, %36 in 1 : vector<2x4xf32>, vector<2x32xf32> -> vector<2x36xf32>
    %cst_17 = arith.constant dense<0.000000e+00> : vector<2x32xf32>
    %44 = tpu.matmul %43, %1, %cst_17 {dimension_numbers = #tpu.dot_dimension_numbers<[1], [0], [0], [1], [0, 0, 1, 1], [], []>} : vector<2x36xf32>, vector<36x32xf32>, vector<2x32xf32> -> vector<2x32xf32>
    %45 = arith.addf %44, %5 : vector<2x32xf32>
    %46 = math.tanh %45 : vector<2x32xf32>
    %47 = tpu.concatenate %46, %40 in 1 : vector<2x32xf32>, vector<2x32xf32> -> vector<2x64xf32>
    %cst_18 = arith.constant dense<0.000000e+00> : vector<2x32xf32>
    %48 = tpu.matmul %47, %2, %cst_18 {dimension_numbers = #tpu.dot_dimension_numbers<[1], [0], [0], [1], [0, 0, 1, 1], [], []>} : vector<2x64xf32>, vector<64x32xf32>, vector<2x32xf32> -> vector<2x32xf32>
    %49 = arith.addf %48, %8 : vector<2x32xf32>
    %50 = math.tanh %49 : vector<2x32xf32>
    %51 = vector.extract_strided_slice %0 {offsets = [4, 0, 0], sizes = [1, 2, 4], strides = [1, 1, 1]} : vector<8x2x4xf32> to vector<1x2x4xf32>
    %52 = vector.shape_cast %51 : vector<1x2x4xf32> to vector<2x4xf32>
    %53 = tpu.concatenate %52, %46 in 1 : vector<2x4xf32>, vector<2x32xf32> -> vector<2x36xf32>
    %cst_19 = arith.constant dense<0.000000e+00> : vector<2x32xf32>
    %54 = tpu.matmul %53, %1, %cst_19 {dimension_numbers = #tpu.dot_dimension_numbers<[1], [0], [0], [1], [0, 0, 1, 1], [], []>} : vector<2x36xf32>, vector<36x32xf32>, vector<2x32xf32> -> vector<2x32xf32>
    %55 = arith.addf %54, %5 : vector<2x32xf32>
    %56 = math.tanh %55 : vector<2x32xf32>
    %57 = tpu.concatenate %56, %50 in 1 : vector<2x32xf32>, vector<2x32xf32> -> vector<2x64xf32>
    %cst_20 = arith.constant dense<0.000000e+00> : vector<2x32xf32>
    %58 = tpu.matmul %57, %2, %cst_20 {dimension_numbers = #tpu.dot_dimension_numbers<[1], [0], [0], [1], [0, 0, 1, 1], [], []>} : vector<2x64xf32>, vector<64x32xf32>, vector<2x32xf32> -> vector<2x32xf32>
    %59 = arith.addf %58, %8 : vector<2x32xf32>
    %60 = math.tanh %59 : vector<2x32xf32>
    %61 = vector.extract_strided_slice %0 {offsets = [5, 0, 0], sizes = [1, 2, 4], strides = [1, 1, 1]} : vector<8x2x4xf32> to vector<1x2x4xf32>
    %62 = vector.shape_cast %61 : vector<1x2x4xf32> to vector<2x4xf32>
    %63 = tpu.concatenate %62, %56 in 1 : vector<2x4xf32>, vector<2x32xf32> -> vector<2x36xf32>
    %cst_21 = arith.constant dense<0.000000e+00> : vector<2x32xf32>
    %64 = tpu.matmul %63, %1, %cst_21 {dimension_numbers = #tpu.dot_dimension_numbers<[1], [0], [0], [1], [0, 0, 1, 1], [], []>} : vector<2x36xf32>, vector<36x32xf32>, vector<2x32xf32> -> vector<2x32xf32>
    %65 = arith.addf %64, %5 : vector<2x32xf32>
    %66 = math.tanh %65 : vector<2x32xf32>
    %67 = tpu.concatenate %66, %60 in 1 : vector<2x32xf32>, vector<2x32xf32> -> vector<2x64xf32>
    %cst_22 = arith.constant dense<0.000000e+00> : vector<2x32xf32>
    %68 = tpu.matmul %67, %2, %cst_22 {dimension_numbers = #tpu.dot_dimension_numbers<[1], [0], [0], [1], [0, 0, 1, 1], [], []>} : vector<2x64xf32>, vector<64x32xf32>, vector<2x32xf32> -> vector<2x32xf32>
    %69 = arith.addf %68, %8 : vector<2x32xf32>
    %70 = math.tanh %69 : vector<2x32xf32>
    %71 = vector.extract_strided_slice %0 {offsets = [6, 0, 0], sizes = [1, 2, 4], strides = [1, 1, 1]} : vector<8x2x4xf32> to vector<1x2x4xf32>
    %72 = vector.shape_cast %71 : vector<1x2x4xf32> to vector<2x4xf32>
    %73 = tpu.concatenate %72, %66 in 1 : vector<2x4xf32>, vector<2x32xf32> -> vector<2x36xf32>
    %cst_23 = arith.constant dense<0.000000e+00> : vector<2x32xf32>
    %74 = tpu.matmul %73, %1, %cst_23 {dimension_numbers = #tpu.dot_dimension_numbers<[1], [0], [0], [1], [0, 0, 1, 1], [], []>} : vector<2x36xf32>, vector<36x32xf32>, vector<2x32xf32> -> vector<2x32xf32>
    %75 = arith.addf %74, %5 : vector<2x32xf32>
    %76 = math.tanh %75 : vector<2x32xf32>
    %77 = tpu.concatenate %76, %70 in 1 : vector<2x32xf32>, vector<2x32xf32> -> vector<2x64xf32>
    %cst_24 = arith.constant dense<0.000000e+00> : vector<2x32xf32>
    %78 = tpu.matmul %77, %2, %cst_24 {dimension_numbers = #tpu.dot_dimension_numbers<[1], [0], [0], [1], [0, 0, 1, 1], [], []>} : vector<2x64xf32>, vector<64x32xf32>, vector<2x32xf32> -> vector<2x32xf32>
    %79 = arith.addf %78, %8 : vector<2x32xf32>
    %80 = math.tanh %79 : vector<2x32xf32>
    %81 = vector.extract_strided_slice %0 {offsets = [7, 0, 0], sizes = [1, 2, 4], strides = [1, 1, 1]} : vector<8x2x4xf32> to vector<1x2x4xf32>
    %82 = vector.shape_cast %81 : vector<1x2x4xf32> to vector<2x4xf32>
    %83 = tpu.concatenate %82, %76 in 1 : vector<2x4xf32>, vector<2x32xf32> -> vector<2x36xf32>
    %cst_25 = arith.constant dense<0.000000e+00> : vector<2x32xf32>
    %84 = tpu.matmul %83, %1, %cst_25 {dimension_numbers = #tpu.dot_dimension_numbers<[1], [0], [0], [1], [0, 0, 1, 1], [], []>} : vector<2x36xf32>, vector<36x32xf32>, vector<2x32xf32> -> vector<2x32xf32>
    %85 = arith.addf %84, %5 : vector<2x32xf32>
    %86 = math.tanh %85 : vector<2x32xf32>
    %87 = tpu.concatenate %86, %80 in 1 : vector<2x32xf32>, vector<2x32xf32> -> vector<2x64xf32>
    %cst_26 = arith.constant dense<0.000000e+00> : vector<2x32xf32>
    %88 = tpu.matmul %87, %2, %cst_26 {dimension_numbers = #tpu.dot_dimension_numbers<[1], [0], [0], [1], [0, 0, 1, 1], [], []>} : vector<2x64xf32>, vector<64x32xf32>, vector<2x32xf32> -> vector<2x32xf32>
    %89 = arith.addf %88, %8 : vector<2x32xf32>
    %90 = math.tanh %89 : vector<2x32xf32>
    %91 = tpu.concatenate %20, %30, %40, %50, %60, %70, %80, %90 in 0 : vector<2x32xf32>, vector<2x32xf32>, vector<2x32xf32>, vector<2x32xf32>, vector<2x32xf32>, vector<2x32xf32>, vector<2x32xf32>, vector<2x32xf32> -> vector<16x32xf32>
    %c0_27 = arith.constant 0 : index
    %c0_28 = arith.constant 0 : index
    %92 = vector.load %arg5[%c0_27, %c0_28] : memref<32x4xf32, #tpu.memory_space<vmem>>, vector<32x4xf32>
    %cst_29 = arith.constant dense<0.000000e+00> : vector<16x4xf32>
    %93 = tpu.matmul %91, %92, %cst_29 {dimension_numbers = #tpu.dot_dimension_numbers<[1], [0], [0], [1], [0, 0, 1, 1], [], []>} : vector<16x32xf32>, vector<32x4xf32>, vector<16x4xf32> -> vector<16x4xf32>
    %c0_30 = arith.constant 0 : index
    %c0_31 = arith.constant 0 : index
    %94 = vector.load %arg6[%c0_30, %c0_31] : memref<1x4xf32, #tpu.memory_space<vmem>>, vector<1x4xf32>
    %95 = vector.broadcast %94 : vector<1x4xf32> to vector<16x4xf32>
    %96 = arith.addf %93, %95 : vector<16x4xf32>
    %97 = math.tanh %96 : vector<16x4xf32>
    %c0_32 = arith.constant 0 : index
    %c0_33 = arith.constant 0 : index
    %98 = vector.load %arg7[%c0_32, %c0_33] : memref<16x4xf32, #tpu.memory_space<vmem>>, vector<16x4xf32>
    tpu.vector_store %arg7[%c0_32, %c0_33], %97 {strides = array<i32>} : memref<16x4xf32, #tpu.memory_space<vmem>>, vector<16x4xf32>,
    %c0_34 = arith.constant 0 : index
    %c0_35 = arith.constant 0 : index
    %c0_36 = arith.constant 0 : index
    %99 = vector.load %arg8[%c0_34, %c0_35, %c0_36] : memref<2x2x32xf32, #tpu.memory_space<vmem>>, vector<1x2x32xf32>
    %100 = vector.shape_cast %99 : vector<1x2x32xf32> to vector<2x32xf32>
    %101 = vector.shape_cast %86 : vector<2x32xf32> to vector<1x2x32xf32>
    tpu.vector_store %arg8[%c0_34, %c0_35, %c0_36], %101 {strides = array<i32>} : memref<2x2x32xf32, #tpu.memory_space<vmem>>, vector<1x2x32xf32>,
    %c1 = arith.constant 1 : index
    %c0_37 = arith.constant 0 : index
    %c0_38 = arith.constant 0 : index
    %102 = vector.load %arg8[%c1, %c0_37, %c0_38] : memref<2x2x32xf32, #tpu.memory_space<vmem>>, vector<1x2x32xf32>
    %103 = vector.shape_cast %102 : vector<1x2x32xf32> to vector<2x32xf32>
    %104 = vector.shape_cast %90 : vector<2x32xf32> to vector<1x2x32xf32>
    tpu.vector_store %arg8[%c1, %c0_37, %c0_38], %104 {strides = array<i32>} : memref<2x2x32xf32, #tpu.memory_space<vmem>>, vector<1x2x32xf32>,
    return
  }
}

</mosaic_0001>

<bundles_post_ra>
// kernel: tpu_custom_call.1
= control target key start
LH: loop header
LB: loop body
LE: loop exit
PB: predicated region body
PF: predicated region fallthrough
CT: control target
= control target key end

     0   :  { %v2110_v3 = vmov 0.0|0.0   ;;  %vm2111_vm0 = vmmov 0   ;;  %v2112_v6 = vmov 0.0   ;;  %s2521_s0 = inlined_call_operand.vmem [shape: f32[8,2,4], index: 0, kind: input, shape index: {}]   ;;  %s2522_s1 = inlined_call_operand.vmem [shape: f32[36,32], index: 1, kind: input, shape index: {}]   ;;  %s2523_s2 = inlined_call_operand.vmem [shape: f32[1,32], index: 2, kind: input, shape index: {}]   ;;  %s2524_s3 = inlined_call_operand.vmem [shape: f32[64,32], index: 3, kind: input, shape index: {}]   ;;  %s2525_s4 = inlined_call_operand.vmem [shape: f32[1,32], index: 4, kind: input, shape index: {}]   ;;  %s2526_s5 = inlined_call_operand.vmem [shape: f32[32,4], index: 5, kind: input, shape index: {}]   ;;  %s2527_s6 = inlined_call_operand.vmem [shape: f32[1,4], index: 6, kind: input, shape index: {}]   ;;  %s2528_s7 = inlined_call_operand.vmem [shape: f32[16,4], index: 7, kind: output, shape index: {0}]   ;;  %s2529_s8 = inlined_call_operand.hbm [shape: f32[2,2,32], index: 8, kind: output, shape index: {1}]  }
   0x1   :  { %v37_v0 = vld [vmem:[%s2522_s1] sm:$0xff]  ;;  %v38_v1 = vld [vmem:[%s2522_s1 + $0x8] sm:$0xff]  ;;  %v39_v2 = vld [vmem:[%s2522_s1 + $0x10] sm:$0xff]  ;;  %1891 = vmatprep.subr.bf16.mxu0 %v2110_v3  ;;  %1897 = vmatprep.subr.bf16.mxu1 %v2110_v3 }
   0x2   :  { %v2172_v4 = vpack.c.bf16 %v38_v1, %v37_v0  ;;  %v40_v5 = vld [vmem:[%s2522_s1 + $0x18] sm:$0xff]  ;;  %1634 = vmatprep.mubr.msk.f32.mxu0 %vm2111_vm0, %v2112_v6  ;;  %1653 = vmatprep.mubr.msk.f32.mxu1 %vm2111_vm0, %v2112_v6 }
   0x3   :  { %14 = vsyncpa [#allocation3], 0  ;;  %v2183_v7 = vpack.c.bf16 %v40_v5, %v39_v2  ;;  %v29_v8 = vld [vmem:[%s2521_s0] sm:$0x3]  ;;  %vm64_vm1 = vcmask 31744   ;;  %vm70_vm2 = vcmask 1043456  }
   0x4   :  { %1893 = vmatpush3.bf16.msra.mxu0 %v2172_v4  ;;  %v2194_v9 = vld [vmem:[%s2522_s1 + $0x20] sm:$0xf]  ;;  %v65_v10 = vsel %vm64_vm1, %v29_v8, 0.0  ;;  %vm66_vm3 = vcmask 293888   ;;  %v43_v12 = vld [vmem:[%s2524_s3 + $0x8] sm:$0xff]  ;;  %v44_v14 = vld [vmem:[%s2524_s3 + $0x10] sm:$0xff] }
   0x5   :  { %1894 = vmatprep.subr.bf16.mxu0 %v2110_v3  ;;  %v42_v11 = vld [vmem:[%s2524_s3] sm:$0xff]  ;;  %v45_v15 = vld [vmem:[%s2524_s3 + $0x18] sm:$0xff]  ;;  %v47_v18 = vld [vmem:[%s2524_s3 + $0x28] sm:$0xff]  ;;  %vm145_vm4 = vcmask 261120   ;;  %vm147_vm5 = vcmask 523264   ;;  %s2114_s15 = smov 32  }
   0x6   :  { %v2216_v13 = vpack.c.bf16 %v43_v12, %v42_v11  ;;  %v2226_v16 = vpack.c.bf16 %v45_v15, %v44_v14  ;;  %v46_v17 = vld [vmem:[%s2524_s3 + $0x20] sm:$0xff]  ;;  %v48_v20 = vld [vmem:[%s2524_s3 + $0x30] sm:$0xff]  ;;  %v49_v21 = vld [vmem:[%s2524_s3 + $0x38] sm:$0xff]  ;;  %s2113_s3 = smov 4   ;;  %vm1341_vm6 = vcmask 1041408   ;;  %vm1344_vm7 = vcmask 1045504  }
   0x7   :  { %v2235_v19 = vpack.c.bf16 %v47_v18, %v46_v17  ;;  %v2245_v22 = vpack.c.bf16 %v49_v21, %v48_v20  ;;  %v2253_v23 = vld [vmem:[%s2523_s2] ss:$0 sm:$0xff]  ;;  %v30_v29 = vld [vmem:[%s2521_s0 + $0x2] sm:$0x3]  ;;  %v31_v43 = vld [vmem:[%s2521_s0 + $0x4] sm:$0x3] }
   0x8   :  { %1896 = vmatpush3.bf16.msra.mxu0 %v2183_v7  ;;  %1899 = vmatpush3.bf16.msra.mxu1 %v2216_v13  ;;  %v2286_v32 = vld [vmem:[%s2525_s4] ss:$0 sm:$0xff]  ;;  %v32_v56 = vld [vmem:[%s2521_s0 + $0x6] sm:$0x3]  ;;  %v33_v15 = vld [vmem:[%s2521_s0 + $0x8] sm:$0x3] }
   0x9   :  { %1632 = vmatprep.subr.mxu0 %v2112_v6  ;;  %1900 = vmatprep.subr.bf16.mxu1 %v2110_v3  ;;  %vm1445_vm8 = vcmask 254976   ;;  %s2115_s11 = smov [#allocation2]  }
   0xc   :  { %1633 = vmatpush3.msk.msra.mxu0 %vm70_vm2, %v2194_v9  ;;  %1902 = vmatpush3.bf16.msra.mxu1 %v2226_v16 }
   0xd   :  { %1635 = vmatmul.mubr.msk.f32.vlgmr.msra.gmra.mrb[0].mxu0 %vm66_vm3, %v65_v10  ;;  %1909 = vmatprep.subr.bf16.mxu0 %v2110_v3 }
   0xe   :  { %1911 = vmatpush3.bf16.msra.mxu0 %v2172_v4  ;;  %1666 = vmatprep.mubr.msk.f32.mxu0 %vm2111_vm0, %v2112_v6 }
   0xf   :  { %1912 = vmatprep.subr.bf16.mxu0 %v2110_v3  ;;  %1903 = vmatprep.subr.bf16.mxu1 %v2110_v3 }
  0x10   :  { %1905 = vmatpush3.bf16.msra.mxu1 %v2235_v19 }
  0x11   :  { %1906 = vmatprep.subr.bf16.mxu1 %v2110_v3 }
  0x12   :  { %1914 = vmatpush3.bf16.msra.mxu0 %v2183_v7 }
  0x13   :  { %1664 = vmatprep.subr.mxu0 %v2112_v6 }
  0x14   :  { %1908 = vmatpush3.bf16.msra.mxu1 %v2245_v22 }
  0x15   :  { %1915 = vmatprep.subr.bf16.mxu1 %v2110_v3 }
  0x16   :  { %1665 = vmatpush3.msk.msra.mxu0 %vm70_vm2, %v2194_v9 }
  0x17   :  { %1927 = vmatprep.subr.bf16.mxu0 %v2110_v3 }
  0xe0   :  { %v140_v24 = vpop.f32.mrb[0].mxu0 }
  0xe1   :  { %v141_v25 = vadd.f32 %v2253_v23, %v140_v24  ;;  %v1636_v26 = vpop.f32.mrb[1].mxu0 }
  0xe3   :  { %2050 = vtanh.f32 %v141_v25 }
  0xed   :  { %v2051_v27 = vpop.eup %2050 }
  0xee   :  { %223 = vrot.lane.b32.xlu0 %v2051_v27, %s2113_s3  ;;  %v146_v28 = vsel %vm145_vm4, %v2051_v27, 0.0 }
  0xef   :  { %1654 = vmatmul.mubr.msk.f32.vlgmr.msra.gmra.mrb[0].mxu1 %vm147_vm5, %v146_v28 }
  0xf0   :  { %1917 = vmatpush3.bf16.msra.mxu1 %v2216_v13  ;;  %1685 = vmatprep.mubr.msk.f32.mxu1 %vm2111_vm0, %v2112_v6 }
  0xf1   :  { %1918 = vmatprep.subr.bf16.mxu1 %v2110_v3 }
  0xf4   :  { %1920 = vmatpush3.bf16.msra.mxu1 %v2226_v16 }
  0xf5   :  { %1921 = vmatprep.subr.bf16.mxu1 %v2110_v3 }
  0xf8   :  { %1923 = vmatpush3.bf16.msra.mxu1 %v2235_v19 }
  0xf9   :  { %1924 = vmatprep.subr.bf16.mxu1 %v2110_v3 }
  0xfc   :  { %1926 = vmatpush3.bf16.msra.mxu1 %v2245_v22 }
  0xfd   :  { %1945 = vmatprep.subr.bf16.mxu1 %v2110_v3 }
 0x160   :  { %v224_v30 = vpop.permute.xlu0 %223 }
 0x161   :  { %v226_v31 = vsel %vm64_vm1, %v30_v29, %v224_v30 }
 0x162   :  { %1667 = vmatmul.mubr.msk.f32.vlgmr.msra.gmra.mrb[2].mxu0 %vm66_vm3, %v226_v31 }
 0x163   :  { %1929 = vmatpush3.bf16.msra.mxu0 %v2172_v4  ;;  %1698 = vmatprep.mubr.msk.f32.mxu0 %vm2111_vm0, %v2112_v6 }
 0x164   :  { %1930 = vmatprep.subr.bf16.mxu0 %v2110_v3 }
 0x167   :  { %1932 = vmatpush3.bf16.msra.mxu0 %v2183_v7 }
 0x168   :  { %1696 = vmatprep.subr.mxu0 %v2112_v6 }
 0x16b   :  { %1697 = vmatpush3.msk.msra.mxu0 %vm70_vm2, %v2194_v9 }
 0x16c   :  { %1933 = vmatprep.subr.bf16.mxu0 %v2110_v3 }
 0x1c2   :  { %v217_v33 = vpop.f32.mrb[0].mxu1 }
 0x1c3   :  { %v218_v34 = vadd.f32 %v2286_v32, %v217_v33  ;;  %v1655_v35 = vpop.f32.mrb[1].mxu1 }
 0x1c4   :  { %v34_v35 = vld [vmem:[%s2521_s0 + $0xa] sm:$0x3] }
 0x1c5   :  { %2052 = vtanh.f32 %v218_v34 }
 0x1cf   :  { %v2289_v36 = vpop.eup %2052 }
 0x1d0   :  { %302 = vrot.lane.b32.xlu0 %v2289_v36, %s2114_s15 }
 0x235   :  { %v296_v37 = vpop.f32.mrb[2].mxu0 }
 0x236   :  { %v297_v38 = vadd.f32 %v2253_v23, %v296_v37  ;;  %v1668_v39 = vpop.f32.mrb[3].mxu0 }
 0x238   :  { %2054 = vtanh.f32 %v297_v38 }
 0x242   :  { %v2055_v40 = vpop.eup %2054  ;;  %v303_v41 = vpop.permute.xlu0 %302 }
 0x243   :  { %v305_v42 = vsel %vm145_vm4, %v2055_v40, %v303_v41  ;;  %381 = vrot.lane.b32.xlu1 %v2055_v40, %s2113_s3 }
 0x244   :  { %1686 = vmatmul.mubr.msk.f32.vlgmr.msra.gmra.mrb[2].mxu1 %vm147_vm5, %v305_v42 }
 0x245   :  { %1947 = vmatpush3.bf16.msra.mxu1 %v2172_v4  ;;  %1730 = vmatprep.mubr.msk.f32.mxu1 %vm2111_vm0, %v2112_v6 }
 0x246   :  { %1948 = vmatprep.subr.bf16.mxu1 %v2110_v3 }
 0x249   :  { %1950 = vmatpush3.bf16.msra.mxu1 %v2183_v7 }
 0x24a   :  { %1728 = vmatprep.subr.mxu1 %v2112_v6 }
 0x24d   :  { %1729 = vmatpush3.msk.msra.mxu1 %vm70_vm2, %v2194_v9 }
 0x24e   :  { %1951 = vmatprep.subr.bf16.mxu1 %v2110_v3 }
 0x2b5   :  { %v382_v44 = vpop.permute.xlu1 %381 }
 0x2b6   :  { %v384_v45 = vsel %vm64_vm1, %v31_v43, %v382_v44 }
 0x2b7   :  { %1699 = vmatmul.mubr.msk.f32.vlgmr.msra.gmra.mrb[4].mxu0 %vm66_vm3, %v384_v45 }
 0x2b8   :  { %1935 = vmatpush3.bf16.msra.mxu0 %v2216_v13  ;;  %1717 = vmatprep.mubr.msk.f32.mxu0 %vm2111_vm0, %v2112_v6 }
 0x2b9   :  { %1936 = vmatprep.subr.bf16.mxu0 %v2110_v3 }
 0x2bc   :  { %1938 = vmatpush3.bf16.msra.mxu0 %v2226_v16 }
 0x2bd   :  { %1939 = vmatprep.subr.bf16.mxu0 %v2110_v3 }
 0x2c0   :  { %1941 = vmatpush3.bf16.msra.mxu0 %v2235_v19 }
 0x2c1   :  { %1942 = vmatprep.subr.bf16.mxu0 %v2110_v3 }
 0x2c4   :  { %1944 = vmatpush3.bf16.msra.mxu0 %v2245_v22 }
 0x2c5   :  { %1963 = vmatprep.subr.bf16.mxu0 %v2110_v3 }
 0x317   :  { %v375_v46 = vpop.f32.mrb[2].mxu1 }
 0x318   :  { %v376_v47 = vadd.f32 %v2286_v32, %v375_v46  ;;  %v1687_v48 = vpop.f32.mrb[3].mxu1 }
 0x319   :  { %v35_v48 = vld [vmem:[%s2521_s0 + $0xc] sm:$0x3] }
 0x31a   :  { %2056 = vtanh.f32 %v376_v47 }
 0x324   :  { %v2057_v49 = vpop.eup %2056 }
 0x325   :  { %460 = vrot.lane.b32.xlu1 %v2057_v49, %s2114_s15  ;;  %v1328_v62 = vrot.slane %v2057_v49, 6 }
 0x327   :  { %v1342_v1 = vsel %vm1341_vm6, %v2289_v36, %v1328_v62 }
 0x38a   :  { %v454_v50 = vpop.f32.mrb[4].mxu0 }
 0x38b   :  { %v455_v51 = vadd.f32 %v2253_v23, %v454_v50  ;;  %v1700_v52 = vpop.f32.mrb[5].mxu0 }
 0x38d   :  { %2058 = vtanh.f32 %v455_v51 }
 0x397   :  { %v2059_v53 = vpop.eup %2058  ;;  %v461_v54 = vpop.permute.xlu1 %460 }
 0x398   :  { %v463_v55 = vsel %vm145_vm4, %v2059_v53, %v461_v54  ;;  %539 = vrot.lane.b32.xlu0 %v2059_v53, %s2113_s3 }
 0x399   :  { %1718 = vmatmul.mubr.msk.f32.vlgmr.msra.gmra.mrb[6].mxu0 %vm147_vm5, %v463_v55 }
 0x39a   :  { %1965 = vmatpush3.bf16.msra.mxu0 %v2172_v4  ;;  %1762 = vmatprep.mubr.msk.f32.mxu0 %vm2111_vm0, %v2112_v6 }
 0x39b   :  { %1966 = vmatprep.subr.bf16.mxu0 %v2110_v3 }
 0x39e   :  { %1968 = vmatpush3.bf16.msra.mxu0 %v2183_v7 }
 0x39f   :  { %1760 = vmatprep.subr.mxu0 %v2112_v6 }
 0x3a2   :  { %1761 = vmatpush3.msk.msra.mxu0 %vm70_vm2, %v2194_v9 }
 0x3a3   :  { %1969 = vmatprep.subr.bf16.mxu0 %v2110_v3 }
 0x40a   :  { %v540_v57 = vpop.permute.xlu0 %539 }
 0x40b   :  { %v542_v58 = vsel %vm64_vm1, %v32_v56, %v540_v57 }
 0x40c   :  { %1731 = vmatmul.mubr.msk.f32.vlgmr.msra.gmra.mrb[4].mxu1 %vm66_vm3, %v542_v58  ;;  %v36_v58 = vld [vmem:[%s2521_s0 + $0xe] sm:$0x3] }
 0x40d   :  { %1953 = vmatpush3.bf16.msra.mxu1 %v2216_v13  ;;  %1749 = vmatprep.mubr.msk.f32.mxu1 %vm2111_vm0, %v2112_v6 }
 0x40e   :  { %1954 = vmatprep.subr.bf16.mxu1 %v2110_v3 }
 0x411   :  { %1956 = vmatpush3.bf16.msra.mxu1 %v2226_v16 }
 0x412   :  { %1957 = vmatprep.subr.bf16.mxu1 %v2110_v3 }
 0x415   :  { %1959 = vmatpush3.bf16.msra.mxu1 %v2235_v19 }
 0x416   :  { %1960 = vmatprep.subr.bf16.mxu1 %v2110_v3 }
 0x419   :  { %1962 = vmatpush3.bf16.msra.mxu1 %v2245_v22 }
 0x41a   :  { %1981 = vmatprep.subr.bf16.mxu1 %v2110_v3 }
 0x46c   :  { %v533_v59 = vpop.f32.mrb[6].mxu0 }
 0x46d   :  { %v534_v60 = vadd.f32 %v2286_v32, %v533_v59  ;;  %v1719_v61 = vpop.f32.mrb[7].mxu0 }
 0x46f   :  { %2060 = vtanh.f32 %v534_v60 }
 0x479   :  { %v2061_v63 = vpop.eup %2060 }
 0x47a   :  { %618 = vrot.lane.b32.xlu1 %v2061_v63, %s2114_s15  ;;  %v1330_v0 = vrot.slane %v2061_v63, 4 }
 0x47c   :  { %v1343_v2 = vsel %vm70_vm2, %v1342_v1, %v1330_v0 }
 0x4df   :  { %v612_v5 = vpop.f32.mrb[4].mxu1 }
 0x4e0   :  { %v613_v8 = vadd.f32 %v2253_v23, %v612_v5  ;;  %v1732_v10 = vpop.f32.mrb[5].mxu1 }
 0x4e1   :  { %v1349_v10 = vld [vmem:[%s2526_s5] sm:$0xff] }
 0x4e2   :  { %2062 = vtanh.f32 %v613_v8 }
 0x4ec   :  { %v2063_v11 = vpop.eup %2062  ;;  %v619_v12 = vpop.permute.xlu1 %618 }
 0x4ed   :  { %v621_v14 = vsel %vm145_vm4, %v2063_v11, %v619_v12  ;;  %697 = vrot.lane.b32.xlu0 %v2063_v11, %s2113_s3  ;;  %v1350_v11 = vld [vmem:[%s2526_s5 + $0x8] sm:$0xff] }
 0x4ee   :  { %1750 = vmatmul.mubr.msk.f32.vlgmr.msra.gmra.mrb[6].mxu1 %vm147_vm5, %v621_v14  ;;  %v2035_v12 = vpack.c.bf16 %v1350_v11, %v1349_v10  ;;  %v1352_v14 = vld [vmem:[%s2526_s5 + $0x18] sm:$0xff] }
 0x4ef   :  { %1983 = vmatpush3.bf16.msra.mxu1 %v2172_v4  ;;  %1794 = vmatprep.mubr.msk.f32.mxu1 %vm2111_vm0, %v2112_v6 }
 0x4f0   :  { %1984 = vmatprep.subr.bf16.mxu1 %v2110_v3 }
 0x4f3   :  { %1986 = vmatpush3.bf16.msra.mxu1 %v2183_v7 }
 0x4f4   :  { %1792 = vmatprep.subr.mxu1 %v2112_v6 }
 0x4f7   :  { %1793 = vmatpush3.msk.msra.mxu1 %vm70_vm2, %v2194_v9 }
 0x4f8   :  { %1987 = vmatprep.subr.bf16.mxu1 %v2110_v3 }
 0x55f   :  { %v698_v17 = vpop.permute.xlu0 %697 }
 0x560   :  { %v700_v18 = vsel %vm64_vm1, %v33_v15, %v698_v17 }
 0x561   :  { %1763 = vmatmul.mubr.msk.f32.vlgmr.msra.gmra.mrb[8].mxu0 %vm66_vm3, %v700_v18 }
 0x562   :  { %1971 = vmatpush3.bf16.msra.mxu0 %v2216_v13  ;;  %1781 = vmatprep.mubr.msk.f32.mxu0 %vm2111_vm0, %v2112_v6 }
 0x563   :  { %1972 = vmatprep.subr.bf16.mxu0 %v2110_v3 }
 0x566   :  { %1974 = vmatpush3.bf16.msra.mxu0 %v2226_v16 }
 0x567   :  { %1975 = vmatprep.subr.bf16.mxu0 %v2110_v3 }
 0x56a   :  { %1977 = vmatpush3.bf16.msra.mxu0 %v2235_v19 }
 0x56b   :  { %1978 = vmatprep.subr.bf16.mxu0 %v2110_v3 }
 0x56e   :  { %1980 = vmatpush3.bf16.msra.mxu0 %v2245_v22 }
 0x56f   :  { %1999 = vmatprep.subr.bf16.mxu0 %v2110_v3 }
 0x5c1   :  { %v691_v20 = vpop.f32.mrb[6].mxu1 }
 0x5c2   :  { %v692_v21 = vadd.f32 %v2286_v32, %v691_v20  ;;  %v1751_v24 = vpop.f32.mrb[7].mxu1 }
 0x5c4   :  { %2064 = vtanh.f32 %v692_v21 }
 0x5ce   :  { %v2065_v25 = vpop.eup %2064 }
 0x5cf   :  { %776 = vrot.lane.b32.xlu1 %v2065_v25, %s2114_s15  ;;  %v1332_v26 = vrot.slane %v2065_v25, 2 }
 0x5d1   :  { %v2387_v27 = vsel %vm1344_vm7, %v1343_v2, %v1332_v26 }
 0x634   :  { %v770_v28 = vpop.f32.mrb[8].mxu0 }
 0x635   :  { %v771_v29 = vadd.f32 %v2253_v23, %v770_v28  ;;  %v1764_v30 = vpop.f32.mrb[9].mxu0 }
 0x637   :  { %2066 = vtanh.f32 %v771_v29 }
 0x641   :  { %v2067_v31 = vpop.eup %2066  ;;  %v777_v33 = vpop.permute.xlu1 %776 }
 0x642   :  { %v779_v34 = vsel %vm145_vm4, %v2067_v31, %v777_v33  ;;  %855 = vrot.lane.b32.xlu0 %v2067_v31, %s2113_s3 }
 0x643   :  { %1782 = vmatmul.mubr.msk.f32.vlgmr.msra.gmra.mrb[10].mxu0 %vm147_vm5, %v779_v34 }
 0x644   :  { %2001 = vmatpush3.bf16.msra.mxu0 %v2172_v4  ;;  %1826 = vmatprep.mubr.msk.f32.mxu0 %vm2111_vm0, %v2112_v6 }
 0x645   :  { %2002 = vmatprep.subr.bf16.mxu0 %v2110_v3 }
 0x648   :  { %2004 = vmatpush3.bf16.msra.mxu0 %v2183_v7 }
 0x649   :  { %1824 = vmatprep.subr.mxu0 %v2112_v6 }
 0x64c   :  { %1825 = vmatpush3.msk.msra.mxu0 %vm70_vm2, %v2194_v9 }
 0x64d   :  { %2005 = vmatprep.subr.bf16.mxu0 %v2110_v3 }
 0x6b4   :  { %v856_v36 = vpop.permute.xlu0 %855 }
 0x6b5   :  { %v858_v37 = vsel %vm64_vm1, %v34_v35, %v856_v36 }
 0x6b6   :  { %1795 = vmatmul.mubr.msk.f32.vlgmr.msra.gmra.mrb[8].mxu1 %vm66_vm3, %v858_v37 }
 0x6b7   :  { %1989 = vmatpush3.bf16.msra.mxu1 %v2216_v13  ;;  %1813 = vmatprep.mubr.msk.f32.mxu1 %vm2111_vm0, %v2112_v6 }
 0x6b8   :  { %1990 = vmatprep.subr.bf16.mxu1 %v2110_v3 }
 0x6bb   :  { %1992 = vmatpush3.bf16.msra.mxu1 %v2226_v16 }
 0x6bc   :  { %1993 = vmatprep.subr.bf16.mxu1 %v2110_v3 }
 0x6bf   :  { %1995 = vmatpush3.bf16.msra.mxu1 %v2235_v19 }
 0x6c0   :  { %1996 = vmatprep.subr.bf16.mxu1 %v2110_v3 }
 0x6c3   :  { %1998 = vmatpush3.bf16.msra.mxu1 %v2245_v22 }
 0x6c4   :  { %2017 = vmatprep.subr.bf16.mxu1 %v2110_v3 }
 0x716   :  { %v849_v38 = vpop.f32.mrb[10].mxu0 }
 0x717   :  { %v850_v39 = vadd.f32 %v2286_v32, %v849_v38  ;;  %v1783_v40 = vpop.f32.mrb[11].mxu0 }
 0x719   :  { %2068 = vtanh.f32 %v850_v39 }
 0x723   :  { %v2418_v41 = vpop.eup %2068 }
 0x724   :  { %934 = vrot.lane.b32.xlu1 %v2418_v41, %s2114_s15 }
 0x789   :  { %v928_v42 = vpop.f32.mrb[8].mxu1 }
 0x78a   :  { %v929_v43 = vadd.f32 %v2253_v23, %v928_v42  ;;  %v1796_v44 = vpop.f32.mrb[9].mxu1 }
 0x78c   :  { %2070 = vtanh.f32 %v929_v43 }
 0x796   :  { %v2071_v45 = vpop.eup %2070  ;;  %v935_v46 = vpop.permute.xlu1 %934 }
 0x797   :  { %v937_v47 = vsel %vm145_vm4, %v2071_v45, %v935_v46  ;;  %1013 = vrot.lane.b32.xlu0 %v2071_v45, %s2113_s3 }
 0x798   :  { %1814 = vmatmul.mubr.msk.f32.vlgmr.msra.gmra.mrb[10].mxu1 %vm147_vm5, %v937_v47 }
 0x799   :  { %2019 = vmatpush3.bf16.msra.mxu1 %v2172_v4  ;;  %1858 = vmatprep.mubr.msk.f32.mxu1 %vm2111_vm0, %v2112_v6 }
 0x79a   :  { %2020 = vmatprep.subr.bf16.mxu1 %v2110_v3 }
 0x79d   :  { %2022 = vmatpush3.bf16.msra.mxu1 %v2183_v7 }
 0x79e   :  { %1856 = vmatprep.subr.mxu1 %v2112_v6 }
 0x7a1   :  { %1857 = vmatpush3.msk.msra.mxu1 %vm70_vm2, %v2194_v9 }
 0x7a2   :  { %2023 = vmatprep.subr.bf16.mxu1 %v2110_v3 }
 0x809   :  { %v1014_v49 = vpop.permute.xlu0 %1013 }
 0x80a   :  { %v1016_v4 = vsel %vm64_vm1, %v35_v48, %v1014_v49 }
 0x80b   :  { %1827 = vmatmul.mubr.msk.f32.vlgmr.msra.gmra.mrb[12].mxu0 %vm66_vm3, %v1016_v4 }
 0x80c   :  { %2007 = vmatpush3.bf16.msra.mxu0 %v2216_v13  ;;  %1845 = vmatprep.mubr.msk.f32.mxu0 %vm2111_vm0, %v2112_v6 }
 0x80d   :  { %2008 = vmatprep.subr.bf16.mxu0 %v2110_v3 }
 0x810   :  { %2010 = vmatpush3.bf16.msra.mxu0 %v2226_v16 }
 0x811   :  { %2011 = vmatprep.subr.bf16.mxu0 %v2110_v3 }
 0x814   :  { %2013 = vmatpush3.bf16.msra.mxu0 %v2235_v19 }
 0x815   :  { %2014 = vmatprep.subr.bf16.mxu0 %v2110_v3 }
 0x818   :  { %2016 = vmatpush3.bf16.msra.mxu0 %v2245_v22 }
 0x819   :  { %2036 = vmatprep.subr.bf16.mxu0 %v2035_v12 }
 0x86b   :  { %v1007_v7 = vpop.f32.mrb[10].mxu1 }
 0x86c   :  { %v1008_v9 = vadd.f32 %v2286_v32, %v1007_v7  ;;  %v1815_v50 = vpop.f32.mrb[11].mxu1 }
 0x86e   :  { %2072 = vtanh.f32 %v1008_v9 }
 0x878   :  { %v2073_v51 = vpop.eup %2072 }
 0x879   :  { %1092 = vrot.lane.b32.xlu1 %v2073_v51, %s2114_s15 }
 0x8de   :  { %v1086_v52 = vpop.f32.mrb[12].mxu0 }
 0x8df   :  { %v1087_v53 = vadd.f32 %v2253_v23, %v1086_v52  ;;  %v1828_v54 = vpop.f32.mrb[13].mxu0 }
 0x8e1   :  { %2074 = vtanh.f32 %v1087_v53 }
 0x8eb   :  { %v2075_v55 = vpop.eup %2074  ;;  %v1093_v56 = vpop.permute.xlu1 %1092 }
 0x8ec   :  { %v1095_v57 = vsel %vm145_vm4, %v2075_v55, %v1093_v56  ;;  %1171 = vrot.lane.b32.xlu0 %v2075_v55, %s2113_s3 }
 0x8ed   :  { %1846 = vmatmul.mubr.msk.f32.vlgmr.msra.gmra.mrb[14].mxu0 %vm147_vm5, %v1095_v57 }
 0x8ee   :  { %1888 = vmatprep.mubr.msk.f32.mxu0 %vm145_vm4, %v2387_v27  ;;  %2038 = vmatpush3.bf16.msra.mxu0 %v2035_v12 }
 0x95e   :  { %v1172_v59 = vpop.permute.xlu0 %1171 }
 0x95f   :  { %v1174_v60 = vsel %vm64_vm1, %v36_v58, %v1172_v59 }
 0x960   :  { %1859 = vmatmul.mubr.msk.f32.vlgmr.msra.gmra.mrb[12].mxu1 %vm66_vm3, %v1174_v60 }
 0x961   :  { %2025 = vmatpush3.bf16.msra.mxu1 %v2216_v13  ;;  %1877 = vmatprep.mubr.msk.f32.mxu1 %vm2111_vm0, %v2112_v6  ;;  %v1334_v13 = vrot.slane %v2073_v51, 6 }
 0x962   :  { %2026 = vmatprep.subr.bf16.mxu1 %v2110_v3 }
 0x965   :  { %2028 = vmatpush3.bf16.msra.mxu1 %v2226_v16  ;;  %v1346_v16 = vsel %vm1341_vm6, %v2418_v41, %v1334_v13 }
 0x966   :  { %2029 = vmatprep.subr.bf16.mxu1 %v2110_v3 }
 0x969   :  { %2031 = vmatpush3.bf16.msra.mxu1 %v2235_v19 }
 0x96a   :  { %2032 = vmatprep.subr.bf16.mxu1 %v2110_v3 }
 0x96d   :  { %2034 = vmatpush3.bf16.msra.mxu1 %v2245_v22 }
 0x9c0   :  { %v1165_v61 = vpop.f32.mrb[14].mxu0 }
 0x9c1   :  { %v1166_v62 = vadd.f32 %v2286_v32, %v1165_v61  ;;  %v1847_v63 = vpop.f32.mrb[15].mxu0 }
 0x9c3   :  { %2076 = vtanh.f32 %v1166_v62 }
 0x9cd   :  { %v2077_v0 = vpop.eup %2076 }
 0x9ce   :  { %v1336_v6 = vrot.slane %v2077_v0, 4  ;;  %1250 = vrot.lane.b32.xlu1 %v2077_v0, %s2114_s15 }
 0x9d0   :  { %v1347_v1 = vsel %vm70_vm2, %v1346_v16, %v1336_v6 }
 0xa33   :  { %v1244_v19 = vpop.f32.mrb[12].mxu1 }
 0xa34   :  { %v1245_v3 = vadd.f32 %v2253_v23, %v1244_v19  ;;  %v1860_v2 = vpop.f32.mrb[13].mxu1  ;;  %v1351_v23 = vld [vmem:[%s2526_s5 + $0x10] sm:$0xff]  ;;  %s1456_s5 = sshll.u32 %s2115_s11, 4  ;;  %s1457_s5 = int_to_ptr.vmem [resolvable:$true] %s1456_s5 }
 0xa35   :  { %v2039_v15 = vpack.c.bf16 %v1352_v14, %v1351_v23  ;;  %s2086_s3 = scalar_lea.vmem %s1457_s5, 64  ;;  %p2091_p1 = scmp.lt.s32.totalorder %s1457_s5, %s1457_s5 }
 0xa36   :  { %2078 = vtanh.f32 %v1245_v3  ;;  %p2087_p0 = scmp.ne.s32.totalorder %s1457_s5, %s2086_s3  ;;  %p2092_p2 = scmp.lt.s32.totalorder %s2086_s3, %s2086_s3 }
 0xa37   :  { %2040 = vmatprep.subr.bf16.mxu0 %v2039_v15 }
 0xa38   :  { %2042 = vmatpush3.bf16.msra.mxu0 %v2039_v15  ;;  %p2093_p3 = por %p2092_p2, %p2091_p1 }
 0xa3a   :  { %p2094_p4 = pnand %p2093_p3, %p2087_p0 }
 0xa40   :  { %v2079_v22 = vpop.eup %2078  ;;  %v1251_v5 = vpop.permute.xlu1 %1250 }
 0xa41   :  { %v1253_v8 = vsel %vm145_vm4, %v2079_v22, %v1251_v5  ;;  %1446 = vst.msk [vmem:[#allocation2] sm:$0x3] %vm1445_vm8, %v2079_v22 }
 0xa42   :  { %1878 = vmatmul.mubr.msk.f32.vlgmr.msra.gmra.mrb[14].mxu1 %vm147_vm5, %v1253_v8 }
 0xb15   :  { %v1323_v17 = vpop.f32.mrb[14].mxu1 }
 0xb16   :  { %v1324_v18 = vadd.f32 %v2286_v32, %v1323_v17  ;;  %v1879_v20 = vpop.f32.mrb[15].mxu1 }
 0xb18   :  { %2080 = vtanh.f32 %v1324_v18 }
 0xb22   :  { %v2081_v21 = vpop.eup %2080 }
 0xb23   :  { %v1339_v24 = vrot.slane %v2081_v21, 2  ;;  %1448 = vst.msk [vmem:[#allocation2 + $0x2] sm:$0x3] %vm1445_vm8, %v2081_v21 }
 0xb25   :  { %v1348_v25 = vsel %vm1344_vm7, %v1347_v1, %v1339_v24 }
 0xb26   :  { %1889 = vmatmul.mubr.msk.f32.vlgmr.msra.gmra.mrb[16].mxu0 %vm145_vm4, %v1348_v25 }
 0xb27   :  { %2097 = shalt.err (!%p2094_p4)
}
 0xb28   :  { %s2098_s13 = scalar_lea.hbm %s2529_s8, 64 }
 0xb29   :  { %p2099_p5 = scmp.ne.s32.totalorder %s2529_s8, %s2098_s13  ;;  %p2102_p6 = scmp.lt.u32.totalorder %s2098_s13, %s2529_s8 }
 0xb2b   :  { %p2104_p7 = pnand %p2102_p6, %p2099_p5 }
 0xb2d   :  { %2107 = shalt.err (!%p2104_p7)
}
 0xb2e   :  { %s2116_s17 = smov 2   ;;  %v1495_v32 = vld [vmem:[%s2527_s6] ss:$0 sm:$0xff] }
 0xb2f   :  { %1462 = dma.vmem_to_hbm [thread:$0]  %s1457_s5, 64, %s2529_s8, [#allocation3], %s2114_s15, %s2114_s15, %s2116_s17  }
 0xbf9   :  { %v1890_v26 = vpop.f32.mrb[16].mxu0 }
 0xbfa   :  { %v1438_v27 = vadd.f32 %v1890_v26, %v1495_v32  ;;  %v1432_v28 = vpop.f32.mrb[17].mxu0 }
 0xbfb   :  { %v1433_v29 = vadd.f32 %v1495_v32, %v1432_v28 }
 0xbfc   :  { %2082 = vtanh.f32 %v1438_v27 }
 0xbfd   :  { %2084 = vtanh.f32 %v1433_v29 }
 0xc06   :  { %v2083_v30 = vpop.eup %2082 }
 0xc07   :  { %v2085_v31 = vpop.eup %2084  ;;  %1444 = vst.msk [vmem:[%s2528_s7 + $0x8] sm:$0xff] %vm64_vm1, %v2083_v30 }
 0xc08   :  { %1443 = vst.msk [vmem:[%s2528_s7] sm:$0xff] %vm64_vm1, %v2085_v31 }
 0xc09   :  { %2108 = dma.done.wait [#allocation3], 64  }
 0xc0a   :  { %2109 = vsyncadd [#allocation3], 4294967232 }
 0xc0b   :  { %1468 = vsyncpa [#allocation3], 1 }

</bundles_post_ra>
